<compile_context>
chip_gen: v6e
topology: v6e:2x2x1
jax: 0.10.0
libtpu: 0.0.40
codegen_flags: <defaults>
</compile_context>

<pallas_src>
import math

import jax
import jax.numpy as jnp
from jax.experimental import pallas as pl
from jax.experimental.pallas import tpu as pltpu

_LANES = 128
_TARGET_BLOCK_BYTES = 2 * 1024 * 1024  # ~2 MiB per block (HBM-roofline territory)


def _copy_kernel(x_ref, o_ref):
    # Straight full-tile copy: each grid step moves one lane-dense slab.
    o_ref[...] = x_ref[...]


def _round_down_multiple(x, m):
    return max(m, (x // m) * m)


def _tiled_copy_2d(x2d: jax.Array) -> jax.Array:
    """Pipelined, lane-dense HBM<->VMEM copy of a 2-D array, tiled over rows."""
    rows, cols = x2d.shape
    itemsize = jnp.dtype(x2d.dtype).itemsize
    row_bytes = cols * itemsize

    # Rows per block: fill ~2 MiB, multiple of 32 sublanes (legal for
    # f32/bf16/int8 packing), capped at the full row count (full-dim block is
    # always legal). Ragged last block handled by pl.cdiv + masking.
    cap = _round_down_multiple(_TARGET_BLOCK_BYTES // max(row_bytes, 1), 32)
    block_rows = rows if rows <= cap else cap
    grid = (pl.cdiv(rows, block_rows),)

    return pl.pallas_call(
        _copy_kernel,
        out_shape=jax.ShapeDtypeStruct((rows, cols), x2d.dtype),
        grid_spec=pltpu.PrefetchScalarGridSpec(
            num_scalar_prefetch=0,
            grid=grid,
            in_specs=[pl.BlockSpec((block_rows, cols), lambda i: (i, 0))],
            out_specs=pl.BlockSpec((block_rows, cols), lambda i: (i, 0)),
        ),
        # Output aliases input: when the input buffer is donatable or an
        # intermediate, XLA reuses it in place; otherwise it falls back to a
        # copy with identical semantics.
        input_output_aliases={0: 0},
        compiler_params=pltpu.CompilerParams(
            dimension_semantics=("parallel",),
        ),
    )(x2d)


@jax.jit
def flatten_pallas(x: jax.Array) -> jax.Array:
    """Equivalent of PyTorch Flatten: (N, C, H, W) -> (N, C*H*W)."""
    n = x.shape[0]
    d = math.prod(x.shape[1:])
    total = n * d

    if total % _LANES == 0:
        # Lane-dense path: view all data as (total/128, 128) so block geometry
        # is full-width in both lanes and sublanes regardless of batch size N.
        flat = jnp.reshape(x, (total // _LANES, _LANES))
        out = _tiled_copy_2d(flat)
        return jnp.reshape(out, (n, d))

    # Fallback (feature size not a multiple of 128): keep (N, D) layout with D
    # as the full lane dim (always legal) and tile batches of rows.
    x2d = jnp.reshape(x, (n, d))
    return _tiled_copy_2d(x2d)


if __name__ == "__main__":
    key = jax.random.PRNGKey(0)
    # Small NCHW input consistent with a CIFAR-style feature map.
    x = jax.random.normal(key, (2, 4, 16, 16), dtype=jnp.float32)

    # Reference: PyTorch x.view(-1, C*H*W) == row-major reshape.
    ref = jnp.reshape(x, (x.shape[0], -1))

    out = flatten_pallas(x)
    out = jax.block_until_ready(out)

    assert out.shape == (2, 4 * 16 * 16), out.shape
    assert out.dtype == x.dtype
    assert jnp.array_equal(out, ref), "mismatch vs reference flatten"

    print("KERNEL_OK")
</pallas_src>

<mosaic_0001>
module attributes {stable_mosaic.version = 11 : i64} {
  func.func @_copy_kernel(%arg0: i32, %arg1: memref<16x128xf32, #tpu.memory_space<vmem>>, %arg2: memref<16x128xf32, #tpu.memory_space<vmem>>) attributes {dimension_semantics = [#tpu.dimension_semantics<parallel>], iteration_bounds = array<i64: 1>, scalar_prefetch = 0 : i64, scratch_operands = 0 : i64, tpu.core_type = #tpu.core_type<tc>, window_params = [{transform_indices = @transform_0, window_bounds = array<i64: 16, 128>}, {transform_indices = @transform_1, window_bounds = array<i64: 16, 128>}]} {
    %c0 = arith.constant 0 : index
    %c0_0 = arith.constant 0 : index
    %0 = vector.load %arg1[%c0, %c0_0] : memref<16x128xf32, #tpu.memory_space<vmem>>, vector<16x128xf32>
    %c0_1 = arith.constant 0 : index
    %c0_2 = arith.constant 0 : index
    %1 = vector.load %arg2[%c0_1, %c0_2] : memref<16x128xf32, #tpu.memory_space<vmem>>, vector<16x128xf32>
    tpu.vector_store %arg2[%c0_1, %c0_2], %0 {strides = array<i32>} : memref<16x128xf32, #tpu.memory_space<vmem>>, vector<16x128xf32>,
    return
  }
  func.func @transform_0(%arg0: i32) -> (i32, i32) {
    %c0_i32 = arith.constant 0 : i32
    %c0_i32_0 = arith.constant 0 : i32
    return %arg0, %c0_i32 : i32, i32
  }
  func.func @transform_1(%arg0: i32) -> (i32, i32) {
    %c0_i32 = arith.constant 0 : i32
    %c0_i32_0 = arith.constant 0 : i32
    return %arg0, %c0_i32 : i32, i32
  }
}

</mosaic_0001>

<bundles_post_ra>
// kernel: flatten_pallas.1
= control target key start
LH: loop header
LB: loop body
LE: loop exit
PB: predicated region body
PF: predicated region fallthrough
CT: control target
= control target key end

     0   :  { %s38_s0 = inlined_call_operand.vmem [shape: f32[16,128], index: 0, kind: input, shape index: {}, may-alias: {0,1}]   ;;  %s39_s1 = inlined_call_operand.vmem [shape: f32[16,128], index: 1, kind: output, shape index: {}, may-alias: {0,1}]  }
   0x1   :  { %v8_v0 = vld [vmem:[%s38_s0] sm:$0xff]  ;;  %v9_v1 = vld [vmem:[%s38_s0 + $0x8] sm:$0xff] }
   0x2   :  { %10 = vst [vmem:[%s39_s1] sm:$0xff] %v8_v0  ;;  %11 = vst [vmem:[%s39_s1 + $0x8] sm:$0xff] %v9_v1 }

</bundles_post_ra>
